<compile_context>
chip_gen: v7x
topology: tpu7x:2x2x1
jax: 0.10.0
libtpu: 0.0.40
codegen_flags: <defaults>
</compile_context>

<pallas_src>
import functools

import jax
import jax.numpy as jnp
from jax.experimental import pallas as pl
from jax.experimental.pallas import tpu as pltpu

_LANE = 128   # lane tile width (fp32/bf16)
_SUBLANE = 8  # fp32 sublane tile height


def _round_up(n, m):
    return (n + m - 1) // m * m


def _choose_batch_tiling(B):
    """Pick (tb, Bp): batch tile (multiple of 8, <=256) and padded batch.

    Prefers >=2 grid steps so the 'parallel' batch axis can be split across v7x's
    two TensorCores, and never pads the batch beyond the 8-row sublane multiple."""
    Bp = _round_up(B, _SUBLANE)
    if Bp <= _SUBLANE:
        return Bp, Bp                      # can't split below one sublane group
    hi = min(256, Bp // 2)                 # 256 = MXU height on v6e/v7x
    hi -= hi % _SUBLANE
    for cand in range(hi, _SUBLANE - 1, -_SUBLANE):
        if Bp % cand == 0:
            return cand, Bp
    return Bp, Bp


def _make_mlp_kernel(n_layers):
    """Fused-MLP kernel body. refs: (x, w0, b0, ..., w{L-1}, b{L-1}, out).
    Layers are unrolled at trace time; activations never leave VMEM/vregs."""

    def kernel(*refs):
        x_ref = refs[0]
        o_ref = refs[-1]
        h = x_ref[...].astype(jnp.bfloat16)                 # bf16 MXU operand
        for l in range(n_layers):
            w_ref = refs[1 + 2 * l]
            b_ref = refs[2 + 2 * l]
            z = jnp.dot(h, w_ref[...],                      # MXU, fp32 accumulation
                        preferred_element_type=jnp.float32)
            z = z + b_ref[...]                              # fp32 bias; last one also
                                                            # carries the -1e30 mask
            if l < n_layers - 1:
                h = jnp.maximum(z, 0.0).astype(jnp.bfloat16)  # ReLU -> next MXU op
            else:
                # Softmax(dim=1): padded lanes already hold -1e30 from the bias,
                # so exp() contributes exactly 0 to the denominator.
                m = jnp.max(z, axis=-1, keepdims=True)
                e = jnp.exp(z - m)                          # EUP
                denom = jnp.sum(e, axis=-1, keepdims=True)
                h = e / denom                               # exact normalization
        o_ref[...] = h

    return kernel


def init_params(key, input_size, hidden_sizes, output_size):
    """nn.Linear-style init (uniform +-1/sqrt(fan_in)). Weights stored as (in, out)
    -- i.e. PyTorch's (out, in) weight pre-transposed -- bias as (1, out), fp32."""
    sizes = [input_size] + list(hidden_sizes) + [output_size]
    params = []
    for i in range(len(sizes) - 1):
        fan_in, fan_out = sizes[i], sizes[i + 1]
        key, kw, kb = jax.random.split(key, 3)
        bound = 1.0 / jnp.sqrt(fan_in)
        w = jax.random.uniform(kw, (fan_in, fan_out), jnp.float32, -bound, bound)
        b = jax.random.uniform(kb, (1, fan_out), jnp.float32, -bound, bound)
        params.append((w, b))
    return tuple(params)


def prepare_params(params):
    """ONE-TIME packing (keep the result; do not call per forward):
      * pad every feature dim to a multiple of 128 (lane-dense MXU tiles),
      * cast weights to bf16 (accumulation stays fp32 inside the kernel),
      * keep biases fp32; the LAST bias gets -1e30 on its padded columns so the
        softmax mask falls out of the matmul for free."""
    dims = [params[0][0].shape[0]] + [w.shape[1] for w, _ in params]
    dims_p = [_round_up(d, _LANE) for d in dims]
    n_layers = len(params)
    padded = []
    for l, (w, b) in enumerate(params):
        wp = jnp.zeros((dims_p[l], dims_p[l + 1]), jnp.bfloat16)
        wp = wp.at[: w.shape[0], : w.shape[1]].set(w.astype(jnp.bfloat16))
        fill = -1e30 if l == n_layers - 1 else 0.0
        bp = jnp.full((1, dims_p[l + 1]), fill, jnp.float32)
        bp = bp.at[:, : b.shape[-1]].set(b.reshape(1, -1).astype(jnp.float32))
        padded.append((wp, bp))
    return tuple(padded)


@functools.partial(jax.jit, static_argnums=(2,))
def fully_connected_net(x, padded_params, out_features):
    """x: (B, input_size) fp32; padded_params: output of prepare_params()."""
    B, in_features = x.shape
    n_layers = len(padded_params)
    dims_p = [padded_params[0][0].shape[0]] + [w.shape[1] for w, _ in padded_params]
    in_p, out_p = dims_p[0], dims_p[-1]

    tb, Bp = _choose_batch_tiling(B)
    xp = jnp.zeros((Bp, in_p), jnp.float32).at[:B, :in_features].set(x)

    kernel = _make_mlp_kernel(n_layers)

    in_specs = [pl.BlockSpec((tb, in_p), lambda i: (i, 0))]
    flat_inputs = [xp]
    for wp, bp in padded_params:
        # Grid-invariant operands: single-buffer to halve their VMEM footprint.
        in_specs.append(pl.BlockSpec(wp.shape, lambda i: (0, 0),
                                     pipeline_mode=pl.Buffered(1)))
        in_specs.append(pl.BlockSpec(bp.shape, lambda i: (0, 0),
                                     pipeline_mode=pl.Buffered(1)))
        flat_inputs += [wp, bp]

    # Explicit VMEM budget: resident weights/biases + double-buffered x/out tiles
    # + fp32 activation headroom, clamped to v7x's 64 MiB per-TC ceiling.
    # TODO(synk): if a single layer's resident weight approaches ~48 MiB on v7x,
    # stream that layer via pltpu.emit_pipeline instead of keeping it resident.
    weight_bytes = sum(w.size * w.dtype.itemsize + b.size * b.dtype.itemsize
                       for w, b in padded_params)
    io_bytes = 2 * tb * (in_p + out_p) * 4
    act_bytes = 2 * tb * max(dims_p) * 4
    vmem_limit = int(min(64 << 20,
                         max(16 << 20,
                             weight_bytes + io_bytes + act_bytes + (4 << 20))))

    out_padded = pl.pallas_call(
        kernel,
        out_shape=jax.ShapeDtypeStruct((Bp, out_p), jnp.float32),
        grid=(Bp // tb,),
        in_specs=in_specs,
        out_specs=pl.BlockSpec((tb, out_p), lambda i: (i, 0)),
        compiler_params=pltpu.CompilerParams(
            dimension_semantics=("parallel",),   # batch tiles -> both TCs on v7x
            vmem_limit_bytes=vmem_limit),
    )(*flat_inputs)

    # Strip batch / lane padding.
    return out_padded[:B, :out_features]


if __name__ == "__main__":
    key = jax.random.PRNGKey(0)

    batch = 8
    input_size = 32
    hidden_sizes = [64, 32]
    output_size = 16

    key, kx, kp = jax.random.split(key, 3)
    x = jax.random.normal(kx, (batch, input_size), jnp.float32)
    params = init_params(kp, input_size, hidden_sizes, output_size)

    padded_params = prepare_params(params)      # one-time pack, outside the jit

    out = fully_connected_net(x, padded_params, output_size)
    out = jax.block_until_ready(out)

    # Pure-JAX fp32 reference of the same forward pass.
    h = x
    for i, (w, b) in enumerate(params):
        h = h @ w + b
        if i < len(params) - 1:
            h = jnp.maximum(h, 0.0)
    ref = jax.nn.softmax(h, axis=1)

    assert out.shape == (batch, output_size)
    # exact normalization -> softmax rows sum to 1 within fp32 rounding
    assert bool(jnp.allclose(jnp.sum(out, axis=1), 1.0, atol=1e-3))
    # bf16 MXU operands (fp32 accumulation) -> loose elementwise tolerance vs ref
    assert bool(jnp.allclose(out, ref, atol=2e-2))

    print("KERNEL_OK")
</pallas_src>

<mosaic_0001>
module attributes {stable_mosaic.version = 11 : i64} {
  func.func @kernel(%arg0: i32, %arg1: memref<8x128xf32, #tpu.memory_space<vmem>>, %arg2: memref<128x128xbf16, #tpu.memory_space<vmem>>, %arg3: memref<1x128xf32, #tpu.memory_space<vmem>>, %arg4: memref<128x128xbf16, #tpu.memory_space<vmem>>, %arg5: memref<1x128xf32, #tpu.memory_space<vmem>>, %arg6: memref<128x128xbf16, #tpu.memory_space<vmem>>, %arg7: memref<1x128xf32, #tpu.memory_space<vmem>>, %arg8: memref<8x128xf32, #tpu.memory_space<vmem>>) attributes {dimension_semantics = [#tpu.dimension_semantics<parallel>], iteration_bounds = array<i64: 1>, scalar_prefetch = 0 : i64, scratch_operands = 0 : i64, tpu.core_type = #tpu.core_type<tc>, window_params = [{transform_indices = @transform_0, window_bounds = array<i64: 8, 128>}, {pipeline_mode = #tpu.pipeline_mode<synchronous>, transform_indices = @transform_1, window_bounds = array<i64: 128, 128>}, {pipeline_mode = #tpu.pipeline_mode<synchronous>, transform_indices = @transform_2, window_bounds = array<i64: 1, 128>}, {pipeline_mode = #tpu.pipeline_mode<synchronous>, transform_indices = @transform_3, window_bounds = array<i64: 128, 128>}, {pipeline_mode = #tpu.pipeline_mode<synchronous>, transform_indices = @transform_4, window_bounds = array<i64: 1, 128>}, {pipeline_mode = #tpu.pipeline_mode<synchronous>, transform_indices = @transform_5, window_bounds = array<i64: 128, 128>}, {pipeline_mode = #tpu.pipeline_mode<synchronous>, transform_indices = @transform_6, window_bounds = array<i64: 1, 128>}, {transform_indices = @transform_7, window_bounds = array<i64: 8, 128>}]} {
    %c0 = arith.constant 0 : index
    %c0_0 = arith.constant 0 : index
    %0 = vector.load %arg1[%c0, %c0_0] : memref<8x128xf32, #tpu.memory_space<vmem>>, vector<8x128xf32>
    %1 = arith.truncf %0 : vector<8x128xf32> to vector<8x128xbf16>
    %c0_1 = arith.constant 0 : index
    %c0_2 = arith.constant 0 : index
    %2 = vector.load %arg2[%c0_1, %c0_2] : memref<128x128xbf16, #tpu.memory_space<vmem>>, vector<128x128xbf16>
    %cst = arith.constant dense<0.000000e+00> : vector<8x128xf32>
    %3 = tpu.matmul %1, %2, %cst {dimension_numbers = #tpu.dot_dimension_numbers<[1], [0], [0], [1], [0, 0, 1, 1], [], []>} : vector<8x128xbf16>, vector<128x128xbf16>, vector<8x128xf32> -> vector<8x128xf32>
    %c0_3 = arith.constant 0 : index
    %c0_4 = arith.constant 0 : index
    %4 = vector.load %arg3[%c0_3, %c0_4] : memref<1x128xf32, #tpu.memory_space<vmem>>, vector<1x128xf32>
    %5 = vector.broadcast %4 : vector<1x128xf32> to vector<8x128xf32>
    %6 = arith.addf %3, %5 : vector<8x128xf32>
    %cst_5 = arith.constant 0.000000e+00 : f32
    %7 = vector.broadcast %cst_5 : f32 to vector<8x128xf32>
    %8 = arith.maximumf %6, %7 : vector<8x128xf32>
    %9 = arith.truncf %8 : vector<8x128xf32> to vector<8x128xbf16>
    %c0_6 = arith.constant 0 : index
    %c0_7 = arith.constant 0 : index
    %10 = vector.load %arg4[%c0_6, %c0_7] : memref<128x128xbf16, #tpu.memory_space<vmem>>, vector<128x128xbf16>
    %cst_8 = arith.constant dense<0.000000e+00> : vector<8x128xf32>
    %11 = tpu.matmul %9, %10, %cst_8 {dimension_numbers = #tpu.dot_dimension_numbers<[1], [0], [0], [1], [0, 0, 1, 1], [], []>} : vector<8x128xbf16>, vector<128x128xbf16>, vector<8x128xf32> -> vector<8x128xf32>
    %c0_9 = arith.constant 0 : index
    %c0_10 = arith.constant 0 : index
    %12 = vector.load %arg5[%c0_9, %c0_10] : memref<1x128xf32, #tpu.memory_space<vmem>>, vector<1x128xf32>
    %13 = vector.broadcast %12 : vector<1x128xf32> to vector<8x128xf32>
    %14 = arith.addf %11, %13 : vector<8x128xf32>
    %cst_11 = arith.constant 0.000000e+00 : f32
    %15 = vector.broadcast %cst_11 : f32 to vector<8x128xf32>
    %16 = arith.maximumf %14, %15 : vector<8x128xf32>
    %17 = arith.truncf %16 : vector<8x128xf32> to vector<8x128xbf16>
    %c0_12 = arith.constant 0 : index
    %c0_13 = arith.constant 0 : index
    %18 = vector.load %arg6[%c0_12, %c0_13] : memref<128x128xbf16, #tpu.memory_space<vmem>>, vector<128x128xbf16>
    %cst_14 = arith.constant dense<0.000000e+00> : vector<8x128xf32>
    %19 = tpu.matmul %17, %18, %cst_14 {dimension_numbers = #tpu.dot_dimension_numbers<[1], [0], [0], [1], [0, 0, 1, 1], [], []>} : vector<8x128xbf16>, vector<128x128xbf16>, vector<8x128xf32> -> vector<8x128xf32>
    %c0_15 = arith.constant 0 : index
    %c0_16 = arith.constant 0 : index
    %20 = vector.load %arg7[%c0_15, %c0_16] : memref<1x128xf32, #tpu.memory_space<vmem>>, vector<1x128xf32>
    %21 = vector.broadcast %20 : vector<1x128xf32> to vector<8x128xf32>
    %22 = arith.addf %19, %21 : vector<8x128xf32>
    %cst_17 = arith.constant dense<0xFF800000> : vector<8xf32>
    %23 = vector.multi_reduction <maximumf>, %22, %cst_17 [1] : vector<8x128xf32> to vector<8xf32>
    %24 = vector.shape_cast %23 : vector<8xf32> to vector<8x1xf32>
    %25 = vector.broadcast %24 : vector<8x1xf32> to vector<8x128xf32>
    %26 = arith.subf %22, %25 : vector<8x128xf32>
    %27 = math.exp %26 : vector<8x128xf32>
    %cst_18 = arith.constant dense<0.000000e+00> : vector<8xf32>
    %28 = vector.multi_reduction <add>, %27, %cst_18 [1] : vector<8x128xf32> to vector<8xf32>
    %29 = vector.shape_cast %28 : vector<8xf32> to vector<8x1xf32>
    %30 = vector.broadcast %29 : vector<8x1xf32> to vector<8x128xf32>
    %31 = arith.divf %27, %30 : vector<8x128xf32>
    %c0_19 = arith.constant 0 : index
    %c0_20 = arith.constant 0 : index
    %32 = vector.load %arg8[%c0_19, %c0_20] : memref<8x128xf32, #tpu.memory_space<vmem>>, vector<8x128xf32>
    tpu.vector_store %arg8[%c0_19, %c0_20], %31 {strides = array<i32>} : memref<8x128xf32, #tpu.memory_space<vmem>>, vector<8x128xf32>,
    return
  }
  func.func @transform_0(%arg0: i32) -> (i32, i32) {
    %c0_i32 = arith.constant 0 : i32
    %c0_i32_0 = arith.constant 0 : i32
    return %arg0, %c0_i32 : i32, i32
  }
  func.func @transform_1(%arg0: i32) -> (i32, i32) {
    %c0_i32 = arith.constant 0 : i32
    %c0_i32_0 = arith.constant 0 : i32
    %c0_i32_1 = arith.constant 0 : i32
    return %c0_i32, %c0_i32_0 : i32, i32
  }
  func.func @transform_2(%arg0: i32) -> (i32, i32) {
    %c0_i32 = arith.constant 0 : i32
    %c0_i32_0 = arith.constant 0 : i32
    %c0_i32_1 = arith.constant 0 : i32
    return %c0_i32, %c0_i32_0 : i32, i32
  }
  func.func @transform_3(%arg0: i32) -> (i32, i32) {
    %c0_i32 = arith.constant 0 : i32
    %c0_i32_0 = arith.constant 0 : i32
    %c0_i32_1 = arith.constant 0 : i32
    return %c0_i32, %c0_i32_0 : i32, i32
  }
  func.func @transform_4(%arg0: i32) -> (i32, i32) {
    %c0_i32 = arith.constant 0 : i32
    %c0_i32_0 = arith.constant 0 : i32
    %c0_i32_1 = arith.constant 0 : i32
    return %c0_i32, %c0_i32_0 : i32, i32
  }
  func.func @transform_5(%arg0: i32) -> (i32, i32) {
    %c0_i32 = arith.constant 0 : i32
    %c0_i32_0 = arith.constant 0 : i32
    %c0_i32_1 = arith.constant 0 : i32
    return %c0_i32, %c0_i32_0 : i32, i32
  }
  func.func @transform_6(%arg0: i32) -> (i32, i32) {
    %c0_i32 = arith.constant 0 : i32
    %c0_i32_0 = arith.constant 0 : i32
    %c0_i32_1 = arith.constant 0 : i32
    return %c0_i32, %c0_i32_0 : i32, i32
  }
  func.func @transform_7(%arg0: i32) -> (i32, i32) {
    %c0_i32 = arith.constant 0 : i32
    %c0_i32_0 = arith.constant 0 : i32
    return %arg0, %c0_i32 : i32, i32
  }
}

</mosaic_0001>

<bundles_post_ra>
// kernel: fully_connected_net.1
= control target key start
LH: loop header
LB: loop body
LE: loop exit
PB: predicated region body
PF: predicated region fallthrough
CT: control target
= control target key end

     0   :  { %12 = vsyncpa [#allocation3], 0  ;;  %s832_s0 = inlined_call_operand.vmem [shape: f32[8,128], index: 0, kind: input, shape index: {}]   ;;  %s833_s1 = inlined_call_operand.hbm [shape: bf16[128,128], index: 1, kind: input, shape index: {}]   ;;  %s834_s2 = inlined_call_operand.vmem [shape: f32[1,128], index: 2, kind: input, shape index: {}]   ;;  %s835_s3 = inlined_call_operand.hbm [shape: bf16[128,128], index: 3, kind: input, shape index: {}]   ;;  %s836_s4 = inlined_call_operand.vmem [shape: f32[1,128], index: 4, kind: input, shape index: {}]   ;;  %s837_s5 = inlined_call_operand.hbm [shape: bf16[128,128], index: 5, kind: input, shape index: {}]   ;;  %s838_s6 = inlined_call_operand.vmem [shape: f32[1,128], index: 6, kind: input, shape index: {}]   ;;  %s839_s7 = inlined_call_operand.hbm [shape: f32[8,128], index: 7, kind: output, shape index: {}]  }
   0x1   :  { %13 = vsyncpa [#allocation6], 0 }
   0x2   :  { %14 = vsyncpa [#allocation4], 0  ;;  %s678_s24 = smov [#allocation5]   ;;  %s679_s26 = smov [#allocation2]  }
   0x3   :  { %s36_s25 = sshll.u32 %s678_s24, 4  ;;  %s22_s27 = sshll.u32 %s679_s26, 4  ;;  %s37_s25 = int_to_ptr.vmem [resolvable:$true] %s36_s25  ;;  %s726_s27 = int_to_ptr.vmem [resolvable:$true] %s22_s27 }
   0x4   :  { %s584_s30 = scalar_lea.hbm %s835_s3, 1024 }
   0x5   :  { %p585_p0 = scmp.ne.s32.totalorder %s835_s3, %s584_s30  ;;  %p588_p1 = scmp.lt.u32.totalorder %s584_s30, %s835_s3 }
   0x7   :  { %p590_p2 = pnand %p588_p1, %p585_p0 }
   0x9   :  { %593 = shalt.err (!%p590_p2)
}
   0xa   :  { %s594_s12 = scalar_lea.vmem %s37_s25, 1024  ;;  %p599_p4 = scmp.lt.s32.totalorder %s37_s25, %s37_s25 }
   0xb   :  { %p595_p3 = scmp.ne.s32.totalorder %s37_s25, %s594_s12  ;;  %p600_p5 = scmp.lt.s32.totalorder %s594_s12, %s594_s12 }
   0xd   :  { %p601_p6 = por %p600_p5, %p599_p4 }
   0xf   :  { %p602_p7 = pnand %p601_p6, %p595_p3 }
  0x11   :  { %605 = shalt.err (!%p602_p7)
}
  0x12   :  { %s680_s13 = smov 64   ;;  %s681_s14 = smov 4  }
  0x13   :  { %42 = dma.hbm_to_vmem [thread:$0]  %s835_s3, 1024, %s37_s25, [#allocation6], %s680_s13, %s680_s13, %s681_s14  }
  0x14   :  { %s606_s19 = scalar_lea.hbm %s833_s1, 1024 }
  0x15   :  { %p607_p8 = scmp.ne.s32.totalorder %s833_s1, %s606_s19  ;;  %p610_p9 = scmp.lt.u32.totalorder %s606_s19, %s833_s1 }
  0x17   :  { %p612_p10 = pnand %p610_p9, %p607_p8 }
  0x19   :  { %615 = shalt.err (!%p612_p10)
}
  0x1a   :  { %s616_s24 = scalar_lea.vmem %s726_s27, 1024  ;;  %p621_p12 = scmp.lt.s32.totalorder %s726_s27, %s726_s27 }
  0x1b   :  { %p617_p11 = scmp.ne.s32.totalorder %s726_s27, %s616_s24  ;;  %p622_p13 = scmp.lt.s32.totalorder %s616_s24, %s616_s24 }
  0x1d   :  { %p623_p0 = por %p622_p13, %p621_p12 }
  0x1f   :  { %p624_p1 = pnand %p623_p0, %p617_p11 }
  0x21   :  { %627 = shalt.err (!%p624_p1)
}
  0x22   :  { %28 = dma.hbm_to_vmem [thread:$0]  %s833_s1, 1024, %s726_s27, [#allocation3], %s680_s13, %s680_s13, %s681_s14  }
  0x23   :  { %s682_s26 = smov [#allocation7]   ;;  %s628_s8 = scalar_lea.hbm %s837_s5, 1024 }
  0x24   :  { %s50_s28 = sshll.u32 %s682_s26, 4  ;;  %p629_p2 = scmp.ne.s32.totalorder %s837_s5, %s628_s8  ;;  %s51_s28 = int_to_ptr.vmem [resolvable:$true] %s50_s28 }
  0x25   :  { %p632_p3 = scmp.lt.u32.totalorder %s628_s8, %s837_s5 }
  0x27   :  { %p634_p4 = pnand %p632_p3, %p629_p2 }
  0x29   :  { %637 = shalt.err (!%p634_p4)
}
  0x2a   :  { %s638_s15 = scalar_lea.vmem %s51_s28, 1024  ;;  %p643_p6 = scmp.lt.s32.totalorder %s51_s28, %s51_s28 }
  0x2b   :  { %p639_p5 = scmp.ne.s32.totalorder %s51_s28, %s638_s15  ;;  %p644_p7 = scmp.lt.s32.totalorder %s638_s15, %s638_s15 }
  0x2d   :  { %p645_p8 = por %p644_p7, %p643_p6 }
  0x2f   :  { %p646_p9 = pnand %p645_p8, %p639_p5 }
  0x31   :  { %649 = shalt.err (!%p646_p9)
}
  0x32   :  { %56 = dma.hbm_to_vmem [thread:$0]  %s837_s5, 1024, %s51_s28, [#allocation6], %s680_s13, %s680_s13, %s681_s14  }
  0x33   :  { %672 = dma.done.wait [#allocation3], 1024  }
  0x34   :  { %673 = vsyncadd [#allocation3], 4294966272 }
  0x35   :  { %674 = dma.done.wait [#allocation6], 2048  }
  0x36   :  { %675 = vsyncadd [#allocation6], 4294965248  ;;  %v683_v0 = vmov 0.0   ;;  %vm684_vm0 = vmmov 0   ;;  %v556_v1 = vld [vmem:[#allocation2] sm:$0xff]   ;;  %v557_v2 = vld [vmem:[#allocation2 + $0x8] sm:$0xff]  }
  0x37   :  { %488 = vmatprep.subr.bf16.mxu0 %v683_v0  ;;  %504 = vmatprep.mubr.msk.bf16.mxu0 %vm684_vm0, %v683_v0  ;;  %v558_v3 = vld [vmem:[#allocation2 + $0x10] sm:$0xff]   ;;  %v564_v4 = vld [vmem:[#allocation5] sm:$0xff]   ;;  %v559_v5 = vld [vmem:[#allocation2 + $0x18] sm:$0xff]  }
  0x38   :  { %508 = vmatprep.subr.bf16.mxu1 %v683_v0  ;;  %524 = vmatprep.mubr.msk.bf16.mxu1 %vm684_vm0, %v683_v0  ;;  %v565_v6 = vld [vmem:[#allocation5 + $0x8] sm:$0xff]   ;;  %v560_v7 = vld [vmem:[#allocation2 + $0x20] sm:$0xff]   ;;  %v566_v8 = vld [vmem:[#allocation5 + $0x10] sm:$0xff]  }
  0x39   :  { %489 = vmatpush3.bf16.msra.mxu0 %v556_v1  ;;  %509 = vmatpush3.bf16.msra.mxu1 %v564_v4  ;;  %v561_v9 = vld [vmem:[#allocation2 + $0x28] sm:$0xff]   ;;  %v567_v10 = vld [vmem:[#allocation5 + $0x18] sm:$0xff]   ;;  %v562_v11 = vld [vmem:[#allocation2 + $0x30] sm:$0xff]  }
  0x3a   :  { %490 = vmatprep.subr.bf16.mxu0 %v683_v0  ;;  %510 = vmatprep.subr.bf16.mxu1 %v683_v0  ;;  %v568_v12 = vld [vmem:[#allocation5 + $0x20] sm:$0xff]   ;;  %v563_v13 = vld [vmem:[#allocation2 + $0x38] sm:$0xff]   ;;  %v569_v15 = vld [vmem:[#allocation5 + $0x28] sm:$0xff]  }
  0x3b   :  { %v69_v14 = vld [vmem:[%s832_s0] sm:$0xff]  ;;  %v570_v17 = vld [vmem:[#allocation5 + $0x30] sm:$0xff]   ;;  %v571_v18 = vld [vmem:[#allocation5 + $0x38] sm:$0xff]  }
  0x3c   :  { %v70_v16 = vpack.c.bf16 %v69_v14, %v69_v14  ;;  %v572_v19 = vld [vmem:[#allocation7] sm:$0xff]   ;;  %v573_v20 = vld [vmem:[#allocation7 + $0x8] sm:$0xff]   ;;  %v574_v21 = vld [vmem:[#allocation7 + $0x10] sm:$0xff]  }
  0x3d   :  { %491 = vmatpush3.bf16.msra.mxu0 %v557_v2  ;;  %511 = vmatpush3.bf16.msra.mxu1 %v565_v6  ;;  %v575_v22 = vld [vmem:[#allocation7 + $0x18] sm:$0xff]   ;;  %v576_v23 = vld [vmem:[#allocation7 + $0x20] sm:$0xff]   ;;  %v577_v24 = vld [vmem:[#allocation7 + $0x28] sm:$0xff]  }
  0x3e   :  { %492 = vmatprep.subr.bf16.mxu0 %v683_v0  ;;  %512 = vmatprep.subr.bf16.mxu1 %v683_v0  ;;  %v434_v25 = vld [vmem:[%s834_s2] ss:$0 sm:$0xff]  ;;  %v578_v33 = vld [vmem:[#allocation7 + $0x30] sm:$0xff]   ;;  %v579_v34 = vld [vmem:[#allocation7 + $0x38] sm:$0xff]  }
  0x3f   :  { %v443_v35 = vld [vmem:[%s836_s4] ss:$0 sm:$0xff]  ;;  %s685_s4 = smov [#allocation8]  }
  0x40   :  { %v452_v43 = vld [vmem:[%s838_s6] ss:$0 sm:$0xff]  ;;  %s424_s19 = sshll.u32 %s685_s4, 4  ;;  %s425_s19 = int_to_ptr.vmem [resolvable:$true] %s424_s19 }
  0x41   :  { %493 = vmatpush3.bf16.msra.mxu0 %v558_v3  ;;  %513 = vmatpush3.bf16.msra.mxu1 %v566_v8  ;;  %s650_s6 = scalar_lea.vmem %s425_s19, 128  ;;  %p655_p11 = scmp.lt.s32.totalorder %s425_s19, %s425_s19 }
  0x42   :  { %494 = vmatprep.subr.bf16.mxu0 %v683_v0  ;;  %514 = vmatprep.subr.bf16.mxu1 %v683_v0  ;;  %p651_p10 = scmp.ne.s32.totalorder %s425_s19, %s650_s6  ;;  %p656_p12 = scmp.lt.s32.totalorder %s650_s6, %s650_s6 }
  0x44   :  { %p657_p13 = por %p656_p12, %p655_p11 }
  0x45   :  { %495 = vmatpush3.bf16.msra.mxu0 %v559_v5  ;;  %515 = vmatpush3.bf16.msra.mxu1 %v567_v10 }
  0x46   :  { %496 = vmatprep.subr.bf16.mxu0 %v683_v0  ;;  %516 = vmatprep.subr.bf16.mxu1 %v683_v0  ;;  %p658_p0 = pnand %p657_p13, %p651_p10 }
  0x49   :  { %497 = vmatpush3.bf16.msra.mxu0 %v560_v7  ;;  %517 = vmatpush3.bf16.msra.mxu1 %v568_v12 }
  0x4a   :  { %498 = vmatprep.subr.bf16.mxu0 %v683_v0  ;;  %518 = vmatprep.subr.bf16.mxu1 %v683_v0 }
  0x4d   :  { %499 = vmatpush3.bf16.msra.mxu0 %v561_v9  ;;  %519 = vmatpush3.bf16.msra.mxu1 %v569_v15 }
  0x4e   :  { %500 = vmatprep.subr.bf16.mxu0 %v683_v0  ;;  %520 = vmatprep.subr.bf16.mxu1 %v683_v0 }
  0x51   :  { %501 = vmatpush3.bf16.msra.mxu0 %v562_v11  ;;  %521 = vmatpush3.bf16.msra.mxu1 %v570_v17 }
  0x52   :  { %502 = vmatprep.subr.bf16.mxu0 %v683_v0  ;;  %522 = vmatprep.subr.bf16.mxu1 %v683_v0 }
  0x55   :  { %503 = vmatpush3.bf16.msra.mxu0 %v563_v13  ;;  %523 = vmatpush3.bf16.msra.mxu1 %v571_v18 }
  0x56   :  { %528 = vmatprep.subr.bf16.mxu0 %v683_v0 }
  0x58   :  { %505 = vmatmul.mubr.bf16.vlgmr.msra.gmra.mrb[0].mxu0 %v70_v16 }
  0x59   :  { %544 = vmatprep.mubr.msk.bf16.mxu0 %vm684_vm0, %v683_v0  ;;  %529 = vmatpush3.bf16.msra.mxu0 %v572_v19 }
  0x5a   :  { %530 = vmatprep.subr.bf16.mxu0 %v683_v0 }
  0x5d   :  { %531 = vmatpush3.bf16.msra.mxu0 %v573_v20 }
  0x5e   :  { %532 = vmatprep.subr.bf16.mxu0 %v683_v0 }
  0x61   :  { %533 = vmatpush3.bf16.msra.mxu0 %v574_v21 }
  0x62   :  { %534 = vmatprep.subr.bf16.mxu0 %v683_v0 }
  0x65   :  { %535 = vmatpush3.bf16.msra.mxu0 %v575_v22 }
  0x66   :  { %536 = vmatprep.subr.bf16.mxu0 %v683_v0 }
  0x69   :  { %537 = vmatpush3.bf16.msra.mxu0 %v576_v23 }
  0x6a   :  { %538 = vmatprep.subr.bf16.mxu0 %v683_v0 }
  0x6d   :  { %539 = vmatpush3.bf16.msra.mxu0 %v577_v24 }
  0x6e   :  { %540 = vmatprep.subr.bf16.mxu0 %v683_v0 }
  0x71   :  { %541 = vmatpush3.bf16.msra.mxu0 %v578_v33 }
  0x72   :  { %542 = vmatprep.subr.bf16.mxu0 %v683_v0 }
  0x75   :  { %543 = vmatpush3.bf16.msra.mxu0 %v579_v34 }
 0x12b   :  { %v176_v26 = vpop.f32.mrb[0].mxu0 }
 0x12c   :  { %v177_v27 = vadd.f32 %v434_v25, %v176_v26  ;;  %v506_v28 = vpop.f32.mrb[1].mxu0 }
 0x12d   :  { %v179_v29 = vpop.f32.mrb[2].mxu0 }
 0x12e   :  { %v182_v30 = vmax.f32 %v177_v27, 0.0  ;;  %v507_v31 = vpop.f32.mrb[3].mxu0 }
 0x130   :  { %v183_v32 = vpack.c.bf16 %v182_v30, %v182_v30 }
 0x132   :  { %525 = vmatmul.mubr.bf16.vlgmr.msra.gmra.mrb[0].mxu1 %v183_v32 }
 0x205   :  { %v289_v36 = vpop.f32.mrb[0].mxu1 }
 0x206   :  { %v290_v37 = vadd.f32 %v443_v35, %v289_v36  ;;  %v526_v38 = vpop.f32.mrb[1].mxu1 }
 0x207   :  { %v292_v39 = vpop.f32.mrb[2].mxu1 }
 0x208   :  { %v295_v40 = vmax.f32 %v290_v37, 0.0  ;;  %v527_v41 = vpop.f32.mrb[3].mxu1 }
 0x20a   :  { %v296_v42 = vpack.c.bf16 %v295_v40, %v295_v40 }
 0x20c   :  { %545 = vmatmul.mubr.bf16.vlgmr.msra.gmra.mrb[4].mxu0 %v296_v42 }
 0x2df   :  { %v402_v44 = vpop.f32.mrb[4].mxu0 }
 0x2e0   :  { %v403_v45 = vadd.f32 %v452_v43, %v402_v44  ;;  %v546_v46 = vpop.f32.mrb[5].mxu0 }
 0x2e1   :  { %v405_v47 = vpop.f32.mrb[6].mxu0 }
 0x2e2   :  { %408 = vmax.xlane.f32.xlu0 %v403_v45  ;;  %v547_v48 = vpop.f32.mrb[7].mxu0 }
 0x36f   :  { %v409_v49 = vpop.xlane.xlu0 %408 }
 0x370   :  { %v410_v50 = vsub.f32 %v403_v45, %v409_v49 }
 0x372   :  { %v411_v51 = vmul.f32 1.442695, %v410_v50 }
 0x374   :  { %580 = vpow2.f32 %v411_v51 }
 0x37e   :  { %v581_v52 = vpop.eup %580 }
 0x37f   :  { %413 = vadd.xlane.f32.xlu0 %v581_v52 }
 0x40c   :  { %v414_v53 = vpop.xlane.xlu0 %413 }
 0x40d   :  { %582 = vrcp.f32 %v414_v53 }
 0x417   :  { %v583_v54 = vpop.eup %582 }
 0x418   :  { %v416_v55 = vmul.f32 %v583_v54, %v581_v52 }
 0x41a   :  { %417 = vst [vmem:[#allocation8] sm:$0xff] %v416_v55 }
 0x41b   :  { %661 = shalt.err (!%p658_p0)
}
 0x41c   :  { %s662_s22 = scalar_lea.hbm %s839_s7, 128 }
 0x41d   :  { %p663_p1 = scmp.ne.s32.totalorder %s839_s7, %s662_s22  ;;  %p666_p2 = scmp.lt.u32.totalorder %s662_s22, %s839_s7 }
 0x41f   :  { %p668_p3 = pnand %p666_p2, %p663_p1 }
 0x421   :  { %671 = shalt.err (!%p668_p3)
}
 0x422   :  { %427 = dma.vmem_to_hbm [thread:$0]  %s425_s19, 128, %s839_s7, [#allocation4]  }
 0x423   :  { %676 = dma.done.wait [#allocation4], 128  }
 0x424   :  { %677 = vsyncadd [#allocation4], 4294967168 }
 0x425   :  { %431 = vsyncpa [#allocation3], 1 }
 0x426   :  { %432 = vsyncpa [#allocation6], 1 }
 0x427   :  { %433 = vsyncpa [#allocation4], 1 }

</bundles_post_ra>
